<compile_context>
chip_gen: v7x
topology: tpu7x:2x2x1
jax: 0.10.0
libtpu: 0.0.40
codegen_flags: <defaults>
</compile_context>

<pallas_src>
import jax
import jax.numpy as jnp
from jax.experimental import pallas as pl
from jax.experimental.pallas import tpu as pltpu


def _round_up(x, m):
    return (x + m - 1) // m * m


def _pick_tn(n):
    """Lane-aligned output-feature tile that divides n exactly.

    For large n we split into >=2 tiles so both v7x TensorCores get work even
    when the batch fits in a single batch tile.
    """
    if n <= 256:
        return n
    target = max(256, min(1024, n // 2))
    tn = (target // 128) * 128
    while tn > 128 and n % tn != 0:
        tn -= 128
    return tn if n % tn == 0 else n


def prepare_pooler_params(weight, bias, param_dtype=jnp.bfloat16):
    """One-time parameter prep (do this at load time, not per forward).

    weight: [H_out, H_in]  (PyTorch nn.Linear layout)
    bias:   [H_out]
    Returns (w_padded [H_in, N], b_padded [1, N], h_out) with N = round_up(H_out, 128).
    """
    h_out, _h_in = weight.shape
    w_t = jnp.asarray(weight).T.astype(param_dtype)          # [H_in, H_out]
    b = jnp.asarray(bias).reshape(1, h_out).astype(param_dtype)
    n = _round_up(h_out, 128)
    if n != h_out:
        w_t = jnp.pad(w_t, ((0, 0), (0, n - h_out)))
        b = jnp.pad(b, ((0, 0), (0, n - h_out)))
    return w_t, b, h_out


def _pooler_kernel(x_ref, w_ref, b_ref, o_ref):
    # x_ref: [TB, H] CLS embeddings; w_ref: [H, TN]; b_ref: [1, TN].
    y = jnp.dot(x_ref[...], w_ref[...], preferred_element_type=jnp.float32)
    y = y + b_ref[...].astype(jnp.float32)          # broadcast over rows
    o_ref[...] = jnp.tanh(y).astype(o_ref.dtype)    # tanh in f32, cast on store


def esm_pooler(hidden_states, w_padded, b_padded, h_out=None, *,
               tb=256, tn=None, out_dtype=jnp.float32):
    """ESMPooler forward.

    hidden_states: [B, L, H] float32
    w_padded:      [H, N]  (from prepare_pooler_params; N % 128 == 0)
    b_padded:      [1, N]
    returns pooled_output: [B, h_out] out_dtype
    """
    B, _L, H = hidden_states.shape
    Hw, N = w_padded.shape
    assert Hw == H, "weight input dim must match hidden size"
    assert N % 128 == 0, "weight must be lane-padded (use prepare_pooler_params)"
    if h_out is None:
        h_out = N

    param_dtype = w_padded.dtype

    # CLS pooling + cast in the wrapper (tiny: B*H elements).
    cls = hidden_states[:, 0, :].astype(param_dtype)

    # Batch tile: multiple of 8 sublanes, at most `tb` rows per grid step.
    TB = _round_up(min(tb, _round_up(B, 8)), 8)
    Bp = _round_up(B, TB)
    if Bp != B:
        cls = jnp.pad(cls, ((0, Bp - B), (0, 0)))

    # Output-feature tile.
    TN = _pick_tn(N) if tn is None else tn
    assert TN % 128 == 0 and N % TN == 0, "tn must be a lane-aligned divisor of N"

    nb = Bp // TB
    nn_tiles = N // TN
    grid = (nb, nn_tiles)

    # Weight/bias specs: single-buffer when resident (constant block index),
    # stream with default double-buffering when tiled over N.
    if nn_tiles == 1:
        w_spec = pl.BlockSpec((H, TN), lambda i, j: (0, 0),
                              pipeline_mode=pl.Buffered(1))
        b_spec = pl.BlockSpec((1, TN), lambda i, j: (0, 0),
                              pipeline_mode=pl.Buffered(1))
        w_bufs = 1
    else:
        w_spec = pl.BlockSpec((H, TN), lambda i, j: (0, j))
        b_spec = pl.BlockSpec((1, TN), lambda i, j: (0, j))
        w_bufs = 2

    x_spec = pl.BlockSpec((TB, H), lambda i, j: (i, 0))      # constant over j
    o_spec = pl.BlockSpec((TB, TN), lambda i, j: (i, j))

    # VMEM budget from the actual buffer allocation (+ headroom), clamped to
    # this chip's physical VMEM.
    itemsize = jnp.dtype(param_dtype).itemsize
    out_itemsize = jnp.dtype(out_dtype).itemsize
    est = (w_bufs * (H * TN + TN) * itemsize     # weight + bias buffers
           + 2 * TB * H * itemsize               # activation tiles (double-buffered)
           + 2 * TB * TN * out_itemsize)         # output tiles (double-buffered)
    try:
        vmem_cap = int(pltpu.get_tpu_info().vmem_capacity_bytes)
    except Exception:
        vmem_cap = 64 << 20                      # conservative (v7x per-TC)
    vmem_limit = int(min(max(est + (4 << 20), 16 << 20), vmem_cap))

    out = pl.pallas_call(
        _pooler_kernel,
        out_shape=jax.ShapeDtypeStruct((Bp, N), out_dtype),
        grid=grid,
        in_specs=[x_spec, w_spec, b_spec],
        out_specs=o_spec,
        compiler_params=pltpu.CompilerParams(
            dimension_semantics=("parallel", "parallel"),
            vmem_limit_bytes=vmem_limit,
        ),
    )(cls, w_padded, b_padded)

    # Strip batch / lane padding.
    return out[:B, :h_out]


def _reference(hidden_states, weight, bias):
    """Pure-JAX f32 reference of ESMPooler.forward (PyTorch weight layout)."""
    pre = jnp.matmul(hidden_states[:, 0, :], weight.T,
                     precision=jax.lax.Precision.HIGHEST) + bias
    return jnp.tanh(pre)


if __name__ == "__main__":
    key = jax.random.PRNGKey(0)

    cases = [
        # (B, L, H, param_dtype, tb, tn, atol)
        dict(B=2, L=8, H=32, dtype=jnp.float32, tb=256, tn=None, atol=2e-3),   # lane-pad path, f32 params
        dict(B=2, L=8, H=32, dtype=jnp.bfloat16, tb=256, tn=None, atol=3e-2),  # bf16 params, single tile
        dict(B=12, L=4, H=256, dtype=jnp.bfloat16, tb=8, tn=128, atol=3e-2),   # batch pad 12->16, 2 batch steps, 2 N steps
    ]

    for idx, c in enumerate(cases):
        kk = jax.random.fold_in(key, idx)
        k_h, k_w, k_b = jax.random.split(kk, 3)
        B, L, H = c["B"], c["L"], c["H"]

        hidden_states = jax.random.normal(k_h, (B, L, H), jnp.float32)
        weight = jax.random.normal(k_w, (H, H), jnp.float32) / (float(H) ** 0.5)  # PyTorch [out, in]
        bias = jax.random.normal(k_b, (H,), jnp.float32) * 0.02

        w_p, b_p, h_out = prepare_pooler_params(weight, bias, param_dtype=c["dtype"])
        pooled = esm_pooler(hidden_states, w_p, b_p, h_out, tb=c["tb"], tn=c["tn"])
        pooled = jax.block_until_ready(pooled)

        ref = _reference(hidden_states, weight, bias)
        assert pooled.shape == ref.shape, f"case {idx}: shape {pooled.shape} vs {ref.shape}"
        max_err = float(jnp.max(jnp.abs(pooled.astype(jnp.float32) - ref)))
        assert max_err <= c["atol"], f"case {idx}: max err {max_err} > {c['atol']}"

    print("KERNEL_OK")
</pallas_src>

<mosaic_0001>
module attributes {stable_mosaic.version = 11 : i64} {
  func.func @_pooler_kernel(%arg0: i32, %arg1: i32, %arg2: memref<8x32xf32, #tpu.memory_space<vmem>>, %arg3: memref<32x128xf32, #tpu.memory_space<vmem>>, %arg4: memref<1x128xf32, #tpu.memory_space<vmem>>, %arg5: memref<8x128xf32, #tpu.memory_space<vmem>>) attributes {dimension_semantics = [#tpu.dimension_semantics<parallel>, #tpu.dimension_semantics<parallel>], iteration_bounds = array<i64: 1, 1>, scalar_prefetch = 0 : i64, scratch_operands = 0 : i64, tpu.core_type = #tpu.core_type<tc>, window_params = [{transform_indices = @transform_0, window_bounds = array<i64: 8, 32>}, {pipeline_mode = #tpu.pipeline_mode<synchronous>, transform_indices = @transform_1, window_bounds = array<i64: 32, 128>}, {pipeline_mode = #tpu.pipeline_mode<synchronous>, transform_indices = @transform_2, window_bounds = array<i64: 1, 128>}, {transform_indices = @transform_3, window_bounds = array<i64: 8, 128>}]} {
    %c0 = arith.constant 0 : index
    %c0_0 = arith.constant 0 : index
    %0 = vector.load %arg2[%c0, %c0_0] : memref<8x32xf32, #tpu.memory_space<vmem>>, vector<8x32xf32>
    %c0_1 = arith.constant 0 : index
    %c0_2 = arith.constant 0 : index
    %1 = vector.load %arg3[%c0_1, %c0_2] : memref<32x128xf32, #tpu.memory_space<vmem>>, vector<32x128xf32>
    %cst = arith.constant dense<0.000000e+00> : vector<8x128xf32>
    %2 = tpu.matmul %0, %1, %cst {dimension_numbers = #tpu.dot_dimension_numbers<[1], [0], [0], [1], [0, 0, 1, 1], [], []>} : vector<8x32xf32>, vector<32x128xf32>, vector<8x128xf32> -> vector<8x128xf32>
    %c0_3 = arith.constant 0 : index
    %c0_4 = arith.constant 0 : index
    %3 = vector.load %arg4[%c0_3, %c0_4] : memref<1x128xf32, #tpu.memory_space<vmem>>, vector<1x128xf32>
    %4 = vector.broadcast %3 : vector<1x128xf32> to vector<8x128xf32>
    %5 = arith.addf %2, %4 : vector<8x128xf32>
    %6 = math.tanh %5 : vector<8x128xf32>
    %c0_5 = arith.constant 0 : index
    %c0_6 = arith.constant 0 : index
    %7 = vector.load %arg5[%c0_5, %c0_6] : memref<8x128xf32, #tpu.memory_space<vmem>>, vector<8x128xf32>
    tpu.vector_store %arg5[%c0_5, %c0_6], %6 {strides = array<i32>} : memref<8x128xf32, #tpu.memory_space<vmem>>, vector<8x128xf32>,
    return
  }
  func.func @transform_0(%arg0: i32, %arg1: i32) -> (i32, i32) {
    %c0_i32 = arith.constant 0 : i32
    %c0_i32_0 = arith.constant 0 : i32
    return %arg0, %c0_i32 : i32, i32
  }
  func.func @transform_1(%arg0: i32, %arg1: i32) -> (i32, i32) {
    %c0_i32 = arith.constant 0 : i32
    %c0_i32_0 = arith.constant 0 : i32
    %c0_i32_1 = arith.constant 0 : i32
    return %c0_i32, %c0_i32_0 : i32, i32
  }
  func.func @transform_2(%arg0: i32, %arg1: i32) -> (i32, i32) {
    %c0_i32 = arith.constant 0 : i32
    %c0_i32_0 = arith.constant 0 : i32
    %c0_i32_1 = arith.constant 0 : i32
    return %c0_i32, %c0_i32_0 : i32, i32
  }
  func.func @transform_3(%arg0: i32, %arg1: i32) -> (i32, i32) {
    %c0_i32 = arith.constant 0 : i32
    return %arg0, %arg1 : i32, i32
  }
}

</mosaic_0001>

<bundles_post_ra>
// kernel: tpu_custom_call.1
= control target key start
LH: loop header
LB: loop body
LE: loop exit
PB: predicated region body
PF: predicated region fallthrough
CT: control target
= control target key end

     0   :  { %8 = vsyncpa [#allocation3], 0  ;;  %s325_s0 = inlined_call_operand.hbm [shape: f32[8,32], index: 0, kind: input, shape index: {}]   ;;  %s326_s1 = inlined_call_operand.hbm [shape: f32[32,128], index: 1, kind: input, shape index: {}]   ;;  %s327_s2 = inlined_call_operand.vmem [shape: f32[1,128], index: 2, kind: input, shape index: {}]   ;;  %s328_s3 = inlined_call_operand.hbm [shape: f32[8,128], index: 3, kind: output, shape index: {}]  }
   0x1   :  { %9 = vsyncpa [#allocation6], 0 }
   0x2   :  { %10 = vsyncpa [#allocation4], 0  ;;  %s251_s12 = smov [#allocation2]   ;;  %s252_s14 = smov [#allocation5]  }
   0x3   :  { %s17_s13 = sshll.u32 %s251_s12, 4  ;;  %s26_s15 = sshll.u32 %s252_s14, 4  ;;  %s18_s13 = int_to_ptr.vmem [resolvable:$true] %s17_s13  ;;  %s279_s15 = int_to_ptr.vmem [resolvable:$true] %s26_s15 }
   0x4   :  { %s179_s18 = scalar_lea.hbm %s325_s0, 128 }
   0x5   :  { %p180_p0 = scmp.ne.s32.totalorder %s325_s0, %s179_s18  ;;  %p183_p1 = scmp.lt.u32.totalorder %s179_s18, %s325_s0 }
   0x7   :  { %p185_p2 = pnand %p183_p1, %p180_p0 }
   0x9   :  { %188 = shalt.err (!%p185_p2)
}
   0xa   :  { %s189_s23 = scalar_lea.vmem %s18_s13, 128  ;;  %p194_p4 = scmp.lt.s32.totalorder %s18_s13, %s18_s13 }
   0xb   :  { %p190_p3 = scmp.ne.s32.totalorder %s18_s13, %s189_s23  ;;  %p195_p5 = scmp.lt.s32.totalorder %s189_s23, %s189_s23 }
   0xd   :  { %p196_p6 = por %p195_p5, %p194_p4 }
   0xf   :  { %p197_p7 = pnand %p196_p6, %p190_p3 }
  0x11   :  { %200 = shalt.err (!%p197_p7)
}
  0x12   :  { %20 = dma.hbm_to_vmem [thread:$0]  %s325_s0, 128, %s18_s13, [#allocation3]  }
  0x13   :  { %s201_s28 = scalar_lea.hbm %s326_s1, 512 }
  0x14   :  { %p202_p8 = scmp.ne.s32.totalorder %s326_s1, %s201_s28  ;;  %p205_p9 = scmp.lt.u32.totalorder %s201_s28, %s326_s1 }
  0x16   :  { %p207_p10 = pnand %p205_p9, %p202_p8 }
  0x18   :  { %210 = shalt.err (!%p207_p10)
}
  0x19   :  { %s211_s6 = scalar_lea.vmem %s279_s15, 512  ;;  %p216_p12 = scmp.lt.s32.totalorder %s279_s15, %s279_s15 }
  0x1a   :  { %p212_p11 = scmp.ne.s32.totalorder %s279_s15, %s211_s6  ;;  %p217_p13 = scmp.lt.s32.totalorder %s211_s6, %s211_s6 }
  0x1c   :  { %p218_p0 = por %p217_p13, %p216_p12 }
  0x1e   :  { %p219_p1 = pnand %p218_p0, %p212_p11 }
  0x20   :  { %222 = shalt.err (!%p219_p1)
}
  0x21   :  { %s253_s0 = smov 128   ;;  %s254_s7 = smov 8  }
  0x22   :  { %32 = dma.hbm_to_vmem [thread:$0]  %s326_s1, 512, %s279_s15, [#allocation6], %s253_s0, %s253_s0, %s254_s7  }
  0x23   :  { %245 = dma.done.wait [#allocation3], 128  }
  0x24   :  { %246 = vsyncadd [#allocation3], 4294967168 }
  0x25   :  { %247 = dma.done.wait [#allocation6], 512  }
  0x26   :  { %248 = vsyncadd [#allocation6], 4294966784  ;;  %v255_v0 = vmov 0.0|0.0   ;;  %vm256_vm0 = vmmov 0   ;;  %v257_v1 = vmov 0.0   ;;  %v42_v2 = vld [vmem:[#allocation5] sm:$0xff] }
  0x27   :  { %163 = vmatprep.subr.bf16.mxu0 %v255_v0  ;;  %160 = vmatprep.mubr.msk.f32.mxu0 %vm256_vm0, %v257_v1  ;;  %v43_v3 = vld [vmem:[#allocation5 + $0x8] sm:$0xff]  ;;  %v44_v4 = vld [vmem:[#allocation5 + $0x10] sm:$0xff]  ;;  %v45_v6 = vld [vmem:[#allocation5 + $0x18] sm:$0xff]  ;;  %vm53_vm1 = vcmask 261120   ;;  %s258_s11 = smov [#allocation7]  }
  0x28   :  { %v164_v5 = vpack.c.bf16 %v43_v3, %v42_v2  ;;  %v167_v7 = vpack.c.bf16 %v45_v6, %v44_v4  ;;  %v41_v8 = vld [vmem:[#allocation2] sm:$0xff]  ;;  %s135_s12 = sshll.u32 %s258_s11, 4  ;;  %s136_s12 = int_to_ptr.vmem [resolvable:$true] %s135_s12 }
  0x29   :  { %v145_v9 = vld [vmem:[%s327_s2] ss:$0 sm:$0xff]  ;;  %s223_s13 = scalar_lea.vmem %s136_s12, 128  ;;  %p228_p3 = scmp.lt.s32.totalorder %s136_s12, %s136_s12 }
  0x2a   :  { %165 = vmatpush3.bf16.msra.mxu0 %v164_v5  ;;  %p224_p2 = scmp.ne.s32.totalorder %s136_s12, %s223_s13  ;;  %p229_p4 = scmp.lt.s32.totalorder %s223_s13, %s223_s13 }
  0x2b   :  { %166 = vmatprep.subr.bf16.mxu0 %v255_v0 }
  0x2c   :  { %p230_p5 = por %p229_p4, %p228_p3 }
  0x2e   :  { %168 = vmatpush3.bf16.msra.mxu0 %v167_v7  ;;  %p231_p6 = pnand %p230_p5, %p224_p2 }
  0x31   :  { %161 = vmatmul.mubr.msk.f32.vlgmr.msra.gmra.mrb[0].mxu0 %vm53_vm1, %v41_v8 }
 0x104   :  { %v123_v10 = vpop.f32.mrb[0].mxu0 }
 0x105   :  { %v124_v11 = vadd.f32 %v145_v9, %v123_v10  ;;  %v162_v12 = vpop.f32.mrb[1].mxu0 }
 0x107   :  { %177 = vtanh.f32 %v124_v11 }
 0x111   :  { %v178_v13 = vpop.eup %177 }
 0x112   :  { %128 = vst [vmem:[#allocation7] sm:$0xff] %v178_v13 }
 0x113   :  { %234 = shalt.err (!%p231_p6)
}
 0x114   :  { %s235_s2 = scalar_lea.hbm %s328_s3, 128 }
 0x115   :  { %p236_p7 = scmp.ne.s32.totalorder %s328_s3, %s235_s2  ;;  %p239_p8 = scmp.lt.u32.totalorder %s235_s2, %s328_s3 }
 0x117   :  { %p241_p9 = pnand %p239_p8, %p236_p7 }
 0x119   :  { %244 = shalt.err (!%p241_p9)
}
 0x11a   :  { %138 = dma.vmem_to_hbm [thread:$0]  %s136_s12, 128, %s328_s3, [#allocation4]  }
 0x11b   :  { %249 = dma.done.wait [#allocation4], 128  }
 0x11c   :  { %250 = vsyncadd [#allocation4], 4294967168 }
 0x11d   :  { %142 = vsyncpa [#allocation3], 1 }
 0x11e   :  { %143 = vsyncpa [#allocation6], 1 }
 0x11f   :  { %144 = vsyncpa [#allocation4], 1 }

</bundles_post_ra>
